<compile_context>
chip_gen: v5e
topology: v5e:2x2
jax: 0.10.0
libtpu: 0.0.40
codegen_flags: <defaults>
</compile_context>

<pallas_src>
import functools

import jax
import jax.numpy as jnp
from jax.experimental import pallas as pl
from jax.experimental.pallas import tpu as pltpu


def _round_up(n, m):
    return ((n + m - 1) // m) * m


# ----------------------------------------------------------------------------
# Pallas kernel: one batch element per grid step, all heads lane-packed,
# logits kept transposed (keys on rows / sublanes, queries on lanes).
# ----------------------------------------------------------------------------
def _spatial_attn_kernel(x2_ref, w2_ref, addc_ref, *rest,
                         dvh, dvh_pad, dkh_pad, is_embed):
    if is_embed:
        evec_ref, o_ref = rest
    else:
        (o_ref,) = rest

    x2 = x2_ref[0]            # (Nh*(Cin+1), NL)  bf16 head-block-diag expansion of x
    w2 = w2_ref[...]          # (dvh_pad + 2*dkh_pad, Nh*(Cin+1)) bf16 fused qkv weights

    # Fused 1x1-conv qkv projection for ALL heads in one bf16 MXU matmul
    # (conv bias via ones-row of x2, query scale pre-folded into the q rows).
    qkv = jnp.dot(w2, x2, preferred_element_type=jnp.float32)   # (dvh_pad+2dkh_pad, NL) f32

    # v / q / k row blocks start on 8-sublane boundaries -> free static slices.
    v2 = qkv[:dvh]                                        # (dvh, NL)
    q2 = qkv[dvh_pad:dvh_pad + dkh_pad]                   # (dkh_pad, NL), pad rows == 0
    k2 = qkv[dvh_pad + dkh_pad:dvh_pad + 2 * dkh_pad]     # (dkh_pad, NL), pad rows == 0

    # Transposed logits: rows = keys (h', m), cols = queries (h, l).  Zero
    # padded rows contribute nothing to the contraction.  bf16 MXU, f32 accum.
    logits = jax.lax.dot_general(
        k2.astype(jnp.bfloat16), q2.astype(jnp.bfloat16),
        (((0,), (0,)), ((), ())),
        preferred_element_type=jnp.float32)                # (NL_keys, NL_queries)

    # One precomputed grid-invariant constant: edge bias (+PA) on the diagonal
    # head blocks, -1e30 on every cross-head entry (block-diag mask folded in).
    logits = logits + addc_ref[...]

    # Softmax over the key axis == axis 0 == sublanes: VPU row-group max/adds
    # (no 128-wide XLU lane reductions); EUP approx reciprocal normalisation.
    m = jnp.max(logits, axis=0, keepdims=True)             # (1, NL)
    e = jnp.exp(logits - m)                                 # masked rows -> 0
    s = jnp.sum(e, axis=0, keepdims=True)
    w = e * pl.reciprocal(s, approx=True)                   # (NL_keys, NL_queries) f32

    # PV contraction: plain (dvh, NL_keys) @ (NL_keys, NL_queries) -- native MXU
    # orientation, no relayout of w; cross-head weights are exactly zero.
    out = jnp.dot(v2.astype(jnp.bfloat16), w.astype(jnp.bfloat16),
                  preferred_element_type=jnp.float32)       # (dvh, NL)
    if is_embed:
        out = out + evec_ref[...]                           # + mean(edge_embed, axis=1)

    # TODO(synk): store bf16 here (and in out_shape) if downstream tolerates it.
    o_ref[0] = out.astype(o_ref.dtype)


# ----------------------------------------------------------------------------
# Wrapper: parameter packing and head-layout plumbing in plain JAX.
# ----------------------------------------------------------------------------
@functools.partial(jax.jit, static_argnames=("Nh", "dk", "dv", "is_embed", "part"))
def spatial_attention_forward(x, params, *, Nh, dk, dv, is_embed=True, part=None):
    # TODO(synk): GraphPartition / Partition2Mask (part truthy) branch not ported;
    # only the part=None path is implemented.
    assert part is None
    B, Cin, T, V = x.shape
    L = T * V
    NL = Nh * L
    dkh, dvh = dk // Nh, dv // Nh
    dvh_pad = _round_up(dvh, 8)
    dkh_pad = _round_up(dkh, 8)
    Cin2 = Cin + 1

    conv_w = params["conv_w"].astype(jnp.float32)      # (2*dk+dv, Cin)  1x1 conv kernel
    conv_b = params["conv_b"].astype(jnp.float32)      # (2*dk+dv,)

    # Fused, head-packed qkv weight.  Row blocks [v, q, k] are each zero-padded
    # to an 8-sublane boundary so the kernel's post-projection slices are whole
    # row groups; the dkh**-0.5 query scale is folded into the q rows; the conv
    # bias rides along as an extra input column against a ones-row of x.
    Wq = conv_w[:dk].reshape(Nh, dkh, Cin)
    Wk = conv_w[dk:2 * dk].reshape(Nh, dkh, Cin)
    Wv = conv_w[2 * dk:].reshape(Nh, dvh, Cin)
    bq = conv_b[:dk].reshape(Nh, dkh, 1)
    bk = conv_b[dk:2 * dk].reshape(Nh, dkh, 1)
    bv = conv_b[2 * dk:].reshape(Nh, dvh, 1)
    scale = float(dkh) ** -0.5

    def _pad_rows(w_blk, target):
        return jnp.pad(w_blk, ((0, 0), (0, target - w_blk.shape[1]), (0, 0)))

    Wv_aug = _pad_rows(jnp.concatenate([Wv, bv], axis=2), dvh_pad)
    Wq_aug = _pad_rows(jnp.concatenate([Wq, bq], axis=2) * scale, dkh_pad)
    Wk_aug = _pad_rows(jnp.concatenate([Wk, bk], axis=2), dkh_pad)
    Wall = jnp.concatenate([Wv_aug, Wq_aug, Wk_aug], axis=1)   # (Nh, R, Cin2)
    R = dvh_pad + 2 * dkh_pad
    W2 = Wall.transpose(1, 0, 2).reshape(R, Nh * Cin2).astype(jnp.bfloat16)

    # Head-block-diagonal expansion of x (layout plumbing so the fused
    # projection output is already head-packed on the lane axis).  bf16 halves
    # the per-step X2 DMA.
    xf = x.reshape(B, Cin, L).astype(jnp.float32)
    x_aug = jnp.concatenate([xf, jnp.ones((B, 1, L), jnp.float32)], axis=1)  # (B, Cin2, L)
    eye = jnp.eye(Nh, dtype=jnp.float32)
    X2 = jnp.einsum('hk,bcm->bhckm', eye, x_aug).reshape(B, Nh * Cin2, NL)
    X2 = X2.astype(jnp.bfloat16)

    # Single grid-invariant (NL, NL) additive constant in TRANSPOSED (keys on
    # rows, queries on lanes) orientation: -1e30 on every cross-head entry,
    # plus (for is_embed) edge_embed*sigma + PA on the diagonal head blocks.
    same_head = jnp.kron(jnp.eye(Nh, dtype=jnp.float32),
                         jnp.ones((L, L), jnp.float32)) > 0.5          # (NL, NL) bool
    if is_embed:
        # The (V, V) edge bias is broadcast onto (T*V, T*V) logits; as in the
        # PyTorch module this only type-checks for T == 1.
        assert T == 1, "is_Embed path requires T == 1 (same constraint as the PyTorch code)"
        edge_embed = (params["edge_embed"] * params["A_sum"]
                      * params["sigma"]).astype(jnp.float32)            # (V, V)
        bias_t = (edge_embed + params["PA"].astype(jnp.float32)).T      # transposed (L, L)
        addc = jnp.where(same_head, jnp.tile(bias_t, (Nh, Nh)),
                         jnp.float32(-1e30)).astype(jnp.float32)
    else:
        addc = jnp.where(same_head, jnp.float32(0.0),
                         jnp.float32(-1e30)).astype(jnp.float32)

    in_specs = [
        pl.BlockSpec((1, Nh * Cin2, NL), lambda b: (b, 0, 0)),   # X2 (per batch element)
        pl.BlockSpec((R, Nh * Cin2), lambda b: (0, 0)),          # W2 (grid-invariant)
        pl.BlockSpec((NL, NL), lambda b: (0, 0)),                # mask (+ edge bias)
    ]
    inputs = [X2, W2, addc]

    if is_embed:
        evec = jnp.tile(jnp.mean(edge_embed, axis=1), Nh).reshape(1, NL)  # (1, NL) f32
        in_specs.append(pl.BlockSpec((1, NL), lambda b: (0, 0)))
        inputs.append(evec)

    kernel = functools.partial(_spatial_attn_kernel, dvh=dvh, dvh_pad=dvh_pad,
                               dkh_pad=dkh_pad, is_embed=is_embed)

    # TODO(synk): for large T*V, tile the key axis with an online softmax and
    # re-derive vmem_limit_bytes (v7x only has 64 MiB VMEM); fine at the
    # module's L = num_point sizes.
    # TODO(synk): on v5e, if the EUP saturates, switch to a per-head (Nh, L, L)
    # batched-logits variant so only L*L (not NL*NL) exps are computed per head.
    out = pl.pallas_call(
        kernel,
        out_shape=jax.ShapeDtypeStruct((B, dvh, NL), jnp.float32),
        grid_spec=pltpu.PrefetchScalarGridSpec(
            num_scalar_prefetch=0,
            # One step per batch element; keep B >= 2 (ideally even) per call so
            # both v7x TensorCores get work on the "parallel" batch axis.
            grid=(B,),
            in_specs=in_specs,
            out_specs=pl.BlockSpec((1, dvh, NL), lambda b: (b, 0, 0)),
        ),
        compiler_params=pltpu.CompilerParams(
            dimension_semantics=("parallel",),
            # Explicit scoped-VMEM cap (trivially sufficient at these NL sizes);
            # re-derive together with key-axis tiling before scaling T*V.
            vmem_limit_bytes=48 * 1024 * 1024,
        ),
    )(*inputs)

    # lane-packed (B, dvh, Nh*L) -> combine_heads (B, Nh*dvh, T, V)
    out = out.reshape(B, dvh, Nh, L).transpose(0, 2, 1, 3).reshape(B, Nh * dvh, T, V)
    return out


# ----------------------------------------------------------------------------
# Pure-JAX reference (mirrors the PyTorch forward exactly) for validation.
# ----------------------------------------------------------------------------
def ref_forward(x, conv_w, conv_b, A_sum, edge_embed_p, PA, sigma, Nh, dk, dv, is_embed):
    B, Cin, T, V = x.shape
    qkv = jnp.einsum('oc,bctv->botv', conv_w, x) + conv_b[None, :, None, None]
    q, k, v = qkv[:, :dk], qkv[:, dk:2 * dk], qkv[:, 2 * dk:]
    dkh, dvh = dk // Nh, dv // Nh
    q = q.reshape(B, Nh, dkh, T, V) * (dkh ** -0.5)
    k = k.reshape(B, Nh, dkh, T, V)
    v = v.reshape(B, Nh, dvh, T, V)
    fq = q.reshape(B, Nh, dkh, T * V)
    fk = k.reshape(B, Nh, dkh, T * V)
    fv = v.reshape(B, Nh, dvh, T * V)
    logits = jnp.einsum('bhdl,bhdm->bhlm', fq, fk)
    if is_embed:
        ee = (edge_embed_p * A_sum) * sigma
        logits = logits + ee + PA
    w = jax.nn.softmax(logits, axis=-1)
    attn = jnp.einsum('bhlm,bhdm->bhld', w, fv)
    attn = attn.reshape(B, Nh, T, V, dvh).transpose(0, 1, 4, 2, 3).reshape(B, Nh * dvh, T, V)
    if is_embed:
        attn = attn + ee.mean(axis=1)
    return attn


if __name__ == "__main__":
    # Module hyper-parameters (small, consistent with the PyTorch __init__).
    B = 2
    in_channels = 8
    out_channel = 64          # -> dk = 16, dv = 64
    Nh = 8
    num_point = 16            # V
    V = num_point
    dk = int(0.25 * out_channel)
    dv = out_channel

    key = jax.random.PRNGKey(0)
    ks = jax.random.split(key, 8)

    conv_w = 0.1 * jax.random.normal(ks[0], (2 * dk + dv, in_channels), jnp.float32)
    conv_b = 0.1 * jax.random.normal(ks[1], (2 * dk + dv,), jnp.float32)
    A = (jax.random.uniform(ks[2], (3, V, V)) < 0.3).astype(jnp.float32)   # 3 adjacency parts
    A_sum = A[0] + A[1] + A[2]
    edge_embed = 0.1 * jax.random.normal(ks[3], (V, V), jnp.float32)
    PA = 0.1 * jax.random.normal(ks[4], (V, V), jnp.float32)
    sigma = jnp.array([0.5], jnp.float32)

    params = dict(conv_w=conv_w, conv_b=conv_b, A_sum=A_sum,
                  edge_embed=edge_embed, PA=PA, sigma=sigma)

    # --- is_Embed=True path (T == 1, as required by the module's bias broadcast) ---
    T = 1
    x = jax.random.normal(ks[5], (B, in_channels, T, V), jnp.float32)
    out = spatial_attention_forward(x, params, Nh=Nh, dk=dk, dv=dv, is_embed=True)
    out = jax.block_until_ready(out)
    assert out.shape == (B, dv, T, V), out.shape
    ref = ref_forward(x, conv_w, conv_b, A_sum, edge_embed, PA, sigma, Nh, dk, dv, True)
    err = float(jnp.max(jnp.abs(out - ref)))
    # tolerance accounts for bf16 MXU operands (f32 accumulate) + EUP approx reciprocal
    assert err < 2e-2, f"embed path: max abs error vs reference: {err}"

    # --- is_Embed=False path (exercises T > 1 and the no-bias trace-time branch) ---
    T2 = 2
    x_ne = jax.random.normal(ks[6], (B, in_channels, T2, V), jnp.float32)
    out2 = spatial_attention_forward(x_ne, params, Nh=Nh, dk=dk, dv=dv, is_embed=False)
    out2 = jax.block_until_ready(out2)
    assert out2.shape == (B, dv, T2, V), out2.shape
    ref2 = ref_forward(x_ne, conv_w, conv_b, A_sum, edge_embed, PA, sigma, Nh, dk, dv, False)
    err2 = float(jnp.max(jnp.abs(out2 - ref2)))
    assert err2 < 2e-2, f"non-embed path: max abs error vs reference: {err2}"

    print("KERNEL_OK")
</pallas_src>

<mosaic_0001>
module attributes {stable_mosaic.version = 11 : i64} {
  func.func @_spatial_attn_kernel(%arg0: i32, %arg1: memref<1x72x128xbf16, #tpu.memory_space<vmem>>, %arg2: memref<24x72xbf16, #tpu.memory_space<vmem>>, %arg3: memref<128x128xf32, #tpu.memory_space<vmem>>, %arg4: memref<1x128xf32, #tpu.memory_space<vmem>>, %arg5: memref<1x8x128xf32, #tpu.memory_space<vmem>>) attributes {dimension_semantics = [#tpu.dimension_semantics<parallel>], iteration_bounds = array<i64: 2>, scalar_prefetch = 0 : i64, scratch_operands = 0 : i64, tpu.core_type = #tpu.core_type<tc>, window_params = [{transform_indices = @transform_0, window_bounds = array<i64: 1, 72, 128>}, {pipeline_mode = #tpu.pipeline_mode<synchronous>, transform_indices = @transform_1, window_bounds = array<i64: 24, 72>}, {pipeline_mode = #tpu.pipeline_mode<synchronous>, transform_indices = @transform_2, window_bounds = array<i64: 128, 128>}, {pipeline_mode = #tpu.pipeline_mode<synchronous>, transform_indices = @transform_3, window_bounds = array<i64: 1, 128>}, {transform_indices = @transform_4, window_bounds = array<i64: 1, 8, 128>}]} {
    %c0 = arith.constant 0 : index
    %c0_0 = arith.constant 0 : index
    %c0_1 = arith.constant 0 : index
    %0 = vector.load %arg1[%c0, %c0_0, %c0_1] : memref<1x72x128xbf16, #tpu.memory_space<vmem>>, vector<1x72x128xbf16>
    %1 = vector.shape_cast %0 : vector<1x72x128xbf16> to vector<72x128xbf16>
    %c0_2 = arith.constant 0 : index
    %c0_3 = arith.constant 0 : index
    %2 = vector.load %arg2[%c0_2, %c0_3] : memref<24x72xbf16, #tpu.memory_space<vmem>>, vector<24x72xbf16>
    %cst = arith.constant dense<0.000000e+00> : vector<24x128xf32>
    %3 = tpu.matmul %2, %1, %cst {dimension_numbers = #tpu.dot_dimension_numbers<[1], [0], [0], [1], [0, 0, 1, 1], [], []>} : vector<24x72xbf16>, vector<72x128xbf16>, vector<24x128xf32> -> vector<24x128xf32>
    %4 = vector.extract_strided_slice %3 {offsets = [0, 0], sizes = [8, 128], strides = [1, 1]} : vector<24x128xf32> to vector<8x128xf32>
    %5 = vector.extract_strided_slice %3 {offsets = [8, 0], sizes = [8, 128], strides = [1, 1]} : vector<24x128xf32> to vector<8x128xf32>
    %6 = vector.extract_strided_slice %3 {offsets = [16, 0], sizes = [8, 128], strides = [1, 1]} : vector<24x128xf32> to vector<8x128xf32>
    %7 = arith.truncf %6 : vector<8x128xf32> to vector<8x128xbf16>
    %8 = arith.truncf %5 : vector<8x128xf32> to vector<8x128xbf16>
    %cst_4 = arith.constant dense<0.000000e+00> : vector<128x128xf32>
    %9 = tpu.matmul %7, %8, %cst_4 {dimension_numbers = #tpu.dot_dimension_numbers<[0], [0], [1], [1], [0, 1, 1, 1], [], []>} : vector<8x128xbf16>, vector<8x128xbf16>, vector<128x128xf32> -> vector<128x128xf32>
    %c0_5 = arith.constant 0 : index
    %c0_6 = arith.constant 0 : index
    %10 = vector.load %arg3[%c0_5, %c0_6] : memref<128x128xf32, #tpu.memory_space<vmem>>, vector<128x128xf32>
    %11 = arith.addf %9, %10 : vector<128x128xf32>
    %cst_7 = arith.constant dense<0xFF800000> : vector<128xf32>
    %12 = vector.multi_reduction <maximumf>, %11, %cst_7 [0] : vector<128x128xf32> to vector<128xf32>
    %13 = vector.shape_cast %12 : vector<128xf32> to vector<1x128xf32>
    %14 = vector.broadcast %13 : vector<1x128xf32> to vector<128x128xf32>
    %15 = arith.subf %11, %14 : vector<128x128xf32>
    %16 = math.exp %15 : vector<128x128xf32>
    %cst_8 = arith.constant dense<0.000000e+00> : vector<128xf32>
    %17 = vector.multi_reduction <add>, %16, %cst_8 [0] : vector<128x128xf32> to vector<128xf32>
    %18 = vector.shape_cast %17 : vector<128xf32> to vector<1x128xf32>
    %19 = tpu.reciprocal %18 {approx = true} : vector<1x128xf32> -> vector<1x128xf32>
    %20 = vector.broadcast %19 : vector<1x128xf32> to vector<128x128xf32>
    %21 = arith.mulf %16, %20 : vector<128x128xf32>
    %22 = arith.truncf %4 : vector<8x128xf32> to vector<8x128xbf16>
    %23 = arith.truncf %21 : vector<128x128xf32> to vector<128x128xbf16>
    %cst_9 = arith.constant dense<0.000000e+00> : vector<8x128xf32>
    %24 = tpu.matmul %22, %23, %cst_9 {dimension_numbers = #tpu.dot_dimension_numbers<[1], [0], [0], [1], [0, 0, 1, 1], [], []>} : vector<8x128xbf16>, vector<128x128xbf16>, vector<8x128xf32> -> vector<8x128xf32>
    %c0_10 = arith.constant 0 : index
    %c0_11 = arith.constant 0 : index
    %25 = vector.load %arg4[%c0_10, %c0_11] : memref<1x128xf32, #tpu.memory_space<vmem>>, vector<1x128xf32>
    %26 = vector.broadcast %25 : vector<1x128xf32> to vector<8x128xf32>
    %27 = arith.addf %24, %26 : vector<8x128xf32>
    %c0_12 = arith.constant 0 : index
    %c0_13 = arith.constant 0 : index
    %c0_14 = arith.constant 0 : index
    %28 = vector.load %arg5[%c0_12, %c0_13, %c0_14] : memref<1x8x128xf32, #tpu.memory_space<vmem>>, vector<1x8x128xf32>
    %29 = vector.shape_cast %28 : vector<1x8x128xf32> to vector<8x128xf32>
    %30 = vector.shape_cast %27 : vector<8x128xf32> to vector<1x8x128xf32>
    tpu.vector_store %arg5[%c0_12, %c0_13, %c0_14], %30 {strides = array<i32>} : memref<1x8x128xf32, #tpu.memory_space<vmem>>, vector<1x8x128xf32>,
    return
  }
  func.func @transform_0(%arg0: i32) -> (i32, i32, i32) {
    %c0_i32 = arith.constant 0 : i32
    %c0_i32_0 = arith.constant 0 : i32
    %c0_i32_1 = arith.constant 0 : i32
    return %arg0, %c0_i32, %c0_i32_0 : i32, i32, i32
  }
  func.func @transform_1(%arg0: i32) -> (i32, i32) {
    %c0_i32 = arith.constant 0 : i32
    %c0_i32_0 = arith.constant 0 : i32
    %c0_i32_1 = arith.constant 0 : i32
    return %c0_i32, %c0_i32_0 : i32, i32
  }
  func.func @transform_2(%arg0: i32) -> (i32, i32) {
    %c0_i32 = arith.constant 0 : i32
    %c0_i32_0 = arith.constant 0 : i32
    %c0_i32_1 = arith.constant 0 : i32
    return %c0_i32, %c0_i32_0 : i32, i32
  }
  func.func @transform_3(%arg0: i32) -> (i32, i32) {
    %c0_i32 = arith.constant 0 : i32
    %c0_i32_0 = arith.constant 0 : i32
    %c0_i32_1 = arith.constant 0 : i32
    return %c0_i32, %c0_i32_0 : i32, i32
  }
  func.func @transform_4(%arg0: i32) -> (i32, i32, i32) {
    %c0_i32 = arith.constant 0 : i32
    %c0_i32_0 = arith.constant 0 : i32
    %c0_i32_1 = arith.constant 0 : i32
    return %arg0, %c0_i32, %c0_i32_0 : i32, i32, i32
  }
}

</mosaic_0001>

<bundles_post_ra>
// kernel: tile.18
= control target key start
LH: loop header
LB: loop body
LE: loop exit
PB: predicated region body
PF: predicated region fallthrough
CT: control target
= control target key end

     0   :  { %s22_s0 = inlined_call_operand.vmem [shape: f32[16], index: 0, kind: input, shape index: {}]   ;;  %s23_s1 = inlined_call_operand.vmem [shape: f32[8,16], index: 1, kind: output, shape index: {}]  }
   0x1   :  { %v4_v0 = vld [vmem:[%s22_s0] ss:$0 sm:$0xff] }
   0x2   :  { %5 = vst [vmem:[%s23_s1] sm:$0xff] %v4_v0 }

// kernel: tile.19
= control target key start
LH: loop header
LB: loop body
LE: loop exit
PB: predicated region body
PF: predicated region fallthrough
CT: control target
= control target key end

     0   :  { %s67_s10 = smov 112   ;;  %s68_s11 = smov 80   ;;  %vm3_vm0 = vcmask 130048   ;;  %vm9_vm1 = vcmask 1048448   ;;  %vm15_vm2 = vcmask 917248   ;;  %vm21_vm3 = vcmask 786048   ;;  %s111_s0 = inlined_call_operand.vmem [shape: f32[8,16], index: 0, kind: input, shape index: {}]   ;;  %s112_s1 = inlined_call_operand.vmem [shape: f32[1,128], index: 1, kind: output, shape index: {}]  }
   0x1   :  { %v53_v0 = vld [vmem:[%s111_s0 + $0x7] sm:$0x1]   ;;  %v55_v1 = vld [vmem:[%s111_s0 + $0x5] sm:$0x1]   ;;  %v57_v2 = vld [vmem:[%s111_s0 + $0x3] sm:$0x1]  }
   0x2   :  { %7 = vrot.lane.b32.xlu0 %v53_v0, %s67_s10  ;;  %19 = vrot.lane.b32.xlu1 %v55_v1, %s68_s11  ;;  %s69_s14 = smov 48   ;;  %v54_v3 = vld [vmem:[%s111_s0 + $0x6] sm:$0x1]   ;;  %v56_v4 = vld [vmem:[%s111_s0 + $0x4] sm:$0x1]   ;;  %s70_s21 = smov 96  }
   0x3   :  { %31 = vrot.lane.b32.xlu2 %v57_v2, %s69_s14  ;;  %v58_v5 = vld [vmem:[%s111_s0 + $0x2] sm:$0x1]   ;;  %s71_s22 = smov 64   ;;  %s72_s23 = smov 32   ;;  %v59_v6 = vld [vmem:[%s111_s0 + $0x1] sm:$0x1]  }
   0x4   :  { %s73_s26 = smov 16   ;;  %v2_v7 = vld [vmem:[%s111_s0] sm:$0x1]   ;;  %vm27_vm4 = vcmask 654848   ;;  %vm33_vm5 = vcmask 523648   ;;  %vm39_vm6 = vcmask 392448  }
   0x5   :  { %4 = vst.msk [vmem:[#allocation0] sm:$0x1] %vm3_vm0, %v2_v7   ;;  %vm45_vm7 = vcmask 261248  }
   0xa   :  { %13 = vrot.lane.b32.xlu0 %v54_v3, %s70_s21  ;;  %25 = vrot.lane.b32.xlu1 %v56_v4, %s71_s22 }
   0xb   :  { %37 = vrot.lane.b32.xlu2 %v58_v5, %s72_s23 }
  0x12   :  { %43 = vrot.lane.b32.xlu0 %v59_v6, %s73_s26 }
  0x5d   :  { %v32_v8 = vpop.permute.xlu2 %31  }
  0x65   :  { %v38_v9 = vpop.permute.xlu2 %37  }
  0x74   :  { %v8_v10 = vpop.permute.xlu0 %7   ;;  %v20_v11 = vpop.permute.xlu1 %19  }
  0x75   :  { %10 = vst.msk [vmem:[#allocation0] sm:$0x1] %vm9_vm1, %v8_v10  }
  0x7c   :  { %v14_v12 = vpop.permute.xlu0 %13   ;;  %v26_v13 = vpop.permute.xlu1 %25  }
  0x7d   :  { %16 = vst.msk [vmem:[#allocation0] sm:$0x1] %vm15_vm2, %v14_v12  }
  0x7e   :  { %22 = vst.msk [vmem:[#allocation0] sm:$0x1] %vm21_vm3, %v20_v11  }
  0x7f   :  { %28 = vst.msk [vmem:[#allocation0] sm:$0x1] %vm27_vm4, %v26_v13  }
  0x80   :  { %34 = vst.msk [vmem:[#allocation0] sm:$0x1] %vm33_vm5, %v32_v8  }
  0x81   :  { %40 = vst.msk [vmem:[#allocation0] sm:$0x1] %vm39_vm6, %v38_v9  }
  0x84   :  { %v44_v14 = vpop.permute.xlu0 %43  }
  0x85   :  { %46 = vst.msk [vmem:[#allocation0] sm:$0x1] %vm45_vm7, %v44_v14  }
  0x8c   :  { %v49_v15 = vld [vmem:[#allocation0] sm:$0x1] }
  0x8d   :  { %52 = vst [vmem:[%s112_s1] sm:$0x1] %v49_v15 }

// kernel: spatial_attention_forward.1
= control target key start
LH: loop header
LB: loop body
LE: loop exit
PB: predicated region body
PF: predicated region fallthrough
CT: control target
= control target key end

     0   :  { %s694_s15 = smov 0   ;;  %s868_s0 = inlined_call_operand.vmem [shape: bf16[2,72,128], index: 0, kind: input, shape index: {}]   ;;  %s869_s1 = inlined_call_operand.vmem [shape: bf16[24,72], index: 1, kind: input, shape index: {}]   ;;  %s870_s2 = inlined_call_operand.vmem [shape: f32[128,128], index: 2, kind: input, shape index: {}]   ;;  %s871_s3 = inlined_call_operand.vmem [shape: f32[1,128], index: 3, kind: input, shape index: {}]   ;;  %s872_s4 = inlined_call_operand.vmem [shape: f32[2,8,128], index: 4, kind: output, shape index: {}]  }
   0x1 LB: > { %s571_s16 = sadd.s32 4294967295, %s667_s15   ;;  %p575_p0 = scmp.ge.s32.totalorder %s667_s15, 1  ;;  %s667_s15 = sphi %s694_s15, %s14_s15  }
   0x2   : > { %p162_p1 = scmp.lt.s32.totalorder %s667_s15, 3 }
   0x4   : > { %p163_p2 = pnand %p575_p0, %p162_p1 }
   0x5   : > { %p187_p3 = scmp.lt.s32.totalorder (!%p163_p2), %s571_s16, 1 }
   0x6   : > { %166 = sbr.rel (%p163_p2) target bundleno = 865 (0x361), region = 36 }
   0xb   : > { %s874_s16 = smov (!%p187_p3, %s571_s16), 1  ;;  %vm251_vm0 = vcmask 1043456   ;;  %v614_v8 = vld [vmem:[%s869_s1] sm:$0xff]  ;;  %vm244_vm1 = vcmask 588800   ;;  %v208_v9 = vld [vmem:[%s869_s1 + $0x8] sm:$0xf] }
   0xc   : > { %s616_s17 = smul.u32 36, %s874_s16  ;;  %v214_v10 = vunpack.c.l.b16 %v208_v9  ;;  %vm307_vm2 = vcmask 64512   ;;  %v280_v40 = vld [vmem:[%s870_s2 + $0x28] sm:$0xff]  ;;  %v275_v41 = vld [vmem:[%s870_s2] sm:$0xff]  ;;  %v281_v43 = vld [vmem:[%s870_s2 + $0x30] sm:$0xff]  ;;  %s577_s7 = sshll.u32 %s874_s16, 3 }
   0xd   : > { %v279_v42 = vld [vmem:[%s870_s2 + $0x20] sm:$0xff]  ;;  %v276_v44 = vld [vmem:[%s870_s2 + $0x8] sm:$0xff]  ;;  %v282_v45 = vld [vmem:[%s870_s2 + $0x38] sm:$0xff]  ;;  %s195_s12 = scalar_lea.vmem %s872_s4, %s577_s7 }
   0xe   : > { %s191_s20 = scalar_lea.vmem %s868_s0, %s616_s17  ;;  %v216_v11 = vpack.c.b16 %v214_v10, %v214_v10  ;;  %v284_v47 = vld [vmem:[%s870_s2 + $0x48] sm:$0xff]  ;;  %v277_v49 = vld [vmem:[%s870_s2 + $0x10] sm:$0xff]  ;;  %v278_v50 = vld [vmem:[%s870_s2 + $0x18] sm:$0xff] }
   0xf   : > { %v205_v0 = vld [vmem:[%s191_s20 + $0x20] sm:$0xf]  ;;  %v613_v4 = vld [vmem:[%s191_s20 + $0x18] sm:$0xff]  ;;  %v612_v5 = vld [vmem:[%s191_s20 + $0x10] sm:$0xff] }
  0x10   : > { %v234_v1 = vunpack.c.l.b16 %v205_v0  ;;  %v611_v6 = vld [vmem:[%s191_s20 + $0x8] sm:$0xff]  ;;  %v610_v7 = vld [vmem:[%s191_s20] sm:$0xff]  ;;  %v285_v56 = vld [vmem:[%s870_s2 + $0x50] sm:$0xff] }
  0x11   : > { %v283_v52 = vld [vmem:[%s870_s2 + $0x40] sm:$0xff]  ;;  %v286_v57 = vld [vmem:[%s870_s2 + $0x58] sm:$0xff]  ;;  %v288_v58 = vld [vmem:[%s870_s2 + $0x68] sm:$0xff] }
  0x12   : > { %v239_v2 = vpack.c.b16 %v234_v1, %v234_v1  ;;  %v287_v1 = vld [vmem:[%s870_s2 + $0x60] sm:$0xff]  ;;  %v290_v9 = vld [vmem:[%s870_s2 + $0x78] sm:$0xff] }
  0x14   : > { %v253_v3 = vsel %vm251_vm0, %v239_v2, 0  ;;  %v289_v2 = vld [vmem:[%s870_s2 + $0x70] sm:$0xff] }
  0x15   : > { %258 = vmatpush.bf16.msra.mxu0 %v253_v3 }
  0x19   : > { %259 = vmatpush.bf16.msra.mxu0 %v613_v4 }
  0x1d   : > { %260 = vmatpush.bf16.msra.mxu0 %v612_v5 }
  0x21   : > { %261 = vmatpush.bf16.msra.mxu0 %v611_v6 }
  0x25   : > { %262 = vmatpush.bf16.msra.mxu0 %v610_v7 }
  0x28   : > { %598 = vmatmul.msk.bf16.vlgmr.msra.gmra.mxu0 %vm244_vm1, %v614_v8 }
  0x38   : > { %599 = vmatmul.msk.bf16.gmra.mxu0 %vm244_vm1, %v216_v11 }
  0xa5   : > { %v715_v12 = vpop.f32.mrf.mxu0 }
  0xad   : > { %v266_v13 = vpop.f32.mrf.mxu0 }
  0xae   : > { %v274_v14 = vpack.c.bf16 %v266_v13, %v266_v13 }
  0xb0   : > { %v333_v15 = vsel %vm251_vm0, %v274_v14, 0 }
  0xb1   : > { %342 = vmatpush.bf16.msra.mxu1 %v333_v15  ;;  %615 = vmatpush.bf16.msra.mxu3 %v333_v15 }
  0xb5   : > { %v269_v16 = vpop.f32.mrf.mxu0 }
  0xb6   : > { %v273_v17 = vpack.c.bf16 %v269_v16, %v269_v16 }
  0xb8   : > { %291 = vxpose.xlu0.c.b16.start.end [1/1] (short) %v273_v17, 128 }
  0xbd   : > { %v271_v18 = vpop.f32.mrf.mxu0 }
 0x164   : > { %v299_v19 = vpop.trf.xlu0 }
 0x165   : > { %600 = vmatmul.msk.bf16.vlgmr.msra.gmra.mxu1 %vm307_vm2, %v299_v19 }
 0x174   : > { %v300_v20 = vpop.trf.xlu0 }
 0x175   : > { %601 = vmatmul.msk.bf16.gmra.mxu1 %vm307_vm2, %v300_v20 }
 0x184   : > { %v301_v21 = vpop.trf.xlu0 }
 0x185   : > { %602 = vmatmul.msk.bf16.gmra.mxu1 %vm307_vm2, %v301_v21 }
 0x194   : > { %v302_v22 = vpop.trf.xlu0 }
 0x195   : > { %603 = vmatmul.msk.bf16.gmra.mxu1 %vm307_vm2, %v302_v22 }
 0x1a4   : > { %v303_v23 = vpop.trf.xlu0 }
 0x1a5   : > { %604 = vmatmul.msk.bf16.vlgmr.msra.gmra.mxu3 %vm307_vm2, %v303_v23 }
 0x1b4   : > { %v304_v24 = vpop.trf.xlu0 }
 0x1b5   : > { %605 = vmatmul.msk.bf16.gmra.mxu3 %vm307_vm2, %v304_v24 }
 0x1c4   : > { %v305_v25 = vpop.trf.xlu0 }
 0x1c5   : > { %606 = vmatmul.msk.bf16.gmra.mxu3 %vm307_vm2, %v305_v25 }
 0x1d4   : > { %v306_v26 = vpop.trf.xlu0 }
 0x1d5   : > { %607 = vmatmul.msk.bf16.gmra.mxu3 %vm307_vm2, %v306_v26 }
 0x1e2   : > { %v344_v27 = vpop.f32.mrf.mxu1 }
 0x1e3   : > { %v345_v53 = vadd.f32 %v344_v27, %v275_v41 }
 0x1ea   : > { %v346_v28 = vpop.f32.mrf.mxu1 }
 0x1eb   : > { %v347_v59 = vadd.f32 %v346_v28, %v276_v44 }
 0x1f2   : > { %v349_v29 = vpop.f32.mrf.mxu1 }
 0x1f3   : > { %v350_v62 = vadd.f32 %v349_v29, %v277_v49 }
 0x1fa   : > { %v351_v31 = vpop.f32.mrf.mxu1 }
 0x1fb   : > { %v352_v63 = vadd.f32 %v351_v31, %v278_v50 }
 0x202   : > { %v354_v34 = vpop.f32.mrf.mxu1 }
 0x203   : > { %v355_v54 = vadd.f32 %v354_v34, %v279_v42 }
 0x205   : > { %v384_v7 = vmax.f32 %v345_v53, %v355_v54 }
 0x20a   : > { %v356_v36 = vpop.f32.mrf.mxu1 }
 0x20b   : > { %v357_v51 = vadd.f32 %v356_v36, %v280_v40 }
 0x20d   : > { %v385_v3 = vmax.f32 %v347_v59, %v357_v51 }
 0x212   : > { %v359_v38 = vpop.f32.mrf.mxu1 }
 0x213   : > { %v756_v55 = vadd.f32 %v359_v38, %v281_v43 }
 0x215   : > { %v386_v8 = vmax.f32 %v350_v62, %v756_v55 }
 0x21a   : > { %v361_v46 = vpop.f32.mrf.mxu1 }
 0x21b   : > { %v767_v60 = vadd.f32 %v361_v46, %v282_v45 }
 0x21d   : > { %v387_v10 = vmax.f32 %v352_v63, %v767_v60 }
 0x228   : > { %v364_v30 = vpop.f32.mrf.mxu3 }
 0x229   : > { %v771_v0 = vadd.f32 %v364_v30, %v283_v52 }
 0x22b   : > { %v388_v15 = vmax.f32 %v384_v7, %v771_v0 }
 0x230   : > { %v366_v32 = vpop.f32.mrf.mxu3 }
 0x231   : > { %v769_v61 = vadd.f32 %v366_v32, %v284_v47 }
 0x233   : > { %v389_v11 = vmax.f32 %v385_v3, %v769_v61 }
 0x238   : > { %v369_v33 = vpop.f32.mrf.mxu3 }
 0x239   : > { %v779_v4 = vadd.f32 %v369_v33, %v285_v56 }
 0x23b   : > { %v390_v17 = vmax.f32 %v386_v8, %v779_v4 }
 0x240   : > { %v371_v35 = vpop.f32.mrf.mxu3 }
 0x241   : > { %v781_v5 = vadd.f32 %v371_v35, %v286_v57 }
 0x243   : > { %v391_v18 = vmax.f32 %v387_v10, %v781_v5 }
 0x248   : > { %v374_v37 = vpop.f32.mrf.mxu3 }
 0x249   : > { %v791_v13 = vadd.f32 %v374_v37, %v287_v1 }
 0x24b   : > { %v392_v21 = vmax.f32 %v388_v15, %v791_v13 }
 0x250   : > { %v376_v39 = vpop.f32.mrf.mxu3 }
 0x251   : > { %v783_v6 = vadd.f32 %v376_v39, %v288_v58 }
 0x253   : > { %v393_v19 = vmax.f32 %v389_v11, %v783_v6 }
 0x255   : > { %v396_v24 = vmax.f32 %v392_v21, %v393_v19 }
 0x258   : > { %v379_v48 = vpop.f32.mrf.mxu3 }
 0x259   : > { %v793_v14 = vadd.f32 %v379_v48, %v289_v2 }
 0x25b   : > { %v394_v22 = vmax.f32 %v390_v17, %v793_v14 }
 0x260   : > { %v381_v16 = vpop.f32.mrf.mxu3 }
 0x261   : > { %v799_v20 = vadd.f32 %v381_v16, %v290_v9 }
 0x263   : > { %v395_v23 = vmax.f32 %v391_v18, %v799_v20 }
 0x265   : > { %v397_v25 = vmax.f32 %v394_v22, %v395_v23 }
 0x267   : > { %v398_v26 = vmax.f32 %v396_v24, %v397_v25 }
 0x269   : > { %v399_v27 = vrot.slane %v398_v26, 4 }
 0x26b   : > { %v400_v28 = vmax.f32 %v398_v26, %v399_v27 }
 0x26d   : > { %v401_v29 = vrot.slane %v400_v28, 2 }
 0x26f   : > { %v402_v30 = vmax.f32 %v400_v28, %v401_v29 }
 0x271   : > { %v403_v31 = vrot.slane %v402_v30, 1 }
 0x273   : > { %v804_v32 = vmax.f32 %v402_v30, %v403_v31 }
 0x275   : > { %v405_v33 = vsub.f32 %v345_v53, %v804_v32  ;;  %v406_v34 = vsub.f32 %v347_v59, %v804_v32  ;;  %v407_v35 = vsub.f32 %v350_v62, %v804_v32  ;;  %v408_v36 = vsub.f32 %v352_v63, %v804_v32 }
 0x276   : > { %v409_v39 = vsub.f32 %v355_v54, %v804_v32  ;;  %v410_v41 = vsub.f32 %v357_v51, %v804_v32  ;;  %v411_v43 = vsub.f32 %v756_v55, %v804_v32  ;;  %v412_v45 = vsub.f32 %v767_v60, %v804_v32 }
 0x277   : > { %v421_v37 = vmul.f32 1.442695, %v405_v33  ;;  %v423_v38 = vmul.f32 1.442695, %v406_v34  ;;  %v425_v40 = vmul.f32 1.442695, %v407_v35  ;;  %v413_v49 = vsub.f32 %v771_v0, %v804_v32 }
 0x278   : > { %v427_v42 = vmul.f32 1.442695, %v408_v36  ;;  %v429_v44 = vmul.f32 1.442695, %v409_v39  ;;  %v431_v46 = vmul.f32 1.442695, %v410_v41  ;;  %v414_v53 = vsub.f32 %v769_v61, %v804_v32 }
 0x279   : > { %627 = vpow2.f32 %v421_v37  ;;  %v433_v50 = vmul.f32 1.442695, %v411_v43  ;;  %v435_v54 = vmul.f32 1.442695, %v412_v45  ;;  %v415_v57 = vsub.f32 %v779_v4, %v804_v32 }
 0x27a   : > { %629 = vpow2.f32 %v423_v38  ;;  %v437_v58 = vmul.f32 1.442695, %v413_v49  ;;  %v416_v62 = vsub.f32 %v781_v5, %v804_v32  ;;  %v439_v63 = vmul.f32 1.442695, %v414_v53 }
 0x27b   : > { %631 = vpow2.f32 %v425_v40  ;;  %v417_v1 = vsub.f32 %v791_v13, %v804_v32  ;;  %v441_v2 = vmul.f32 1.442695, %v415_v57  ;;  %v418_v4 = vsub.f32 %v783_v6, %v804_v32 }
 0x27c   : > { %633 = vpow2.f32 %v427_v42  ;;  %v443_v8 = vmul.f32 1.442695, %v416_v62  ;;  %v419_v10 = vsub.f32 %v793_v14, %v804_v32  ;;  %v420_v16 = vsub.f32 %v799_v20, %v804_v32 }
 0x27d   : > { %635 = vpow2.f32 %v429_v44  ;;  %v445_v11 = vmul.f32 1.442695, %v417_v1  ;;  %v447_v17 = vmul.f32 1.442695, %v418_v4  ;;  %v626_v1 = vld [vmem:[%s871_s3] ss:$0 sm:$0xff] }
 0x27e   : > { %637 = vpow2.f32 %v431_v46  ;;  %v449_v19 = vmul.f32 1.442695, %v419_v10  ;;  %v451_v23 = vmul.f32 1.442695, %v420_v16 }
 0x27f   : > { %v816_v47 = vpop.eup %627  ;;  %639 = vpow2.f32 %v433_v50 }
 0x280   : > { %v818_v48 = vpop.eup %629  ;;  %641 = vpow2.f32 %v435_v54 }
 0x281   : > { %v453_v51 = vadd.f32 %v818_v48, %v816_v47  ;;  %v824_v52 = vpop.eup %631  ;;  %643 = vpow2.f32 %v437_v58 }
 0x282   : > { %v829_v56 = vpop.eup %633  ;;  %645 = vpow2.f32 %v439_v63 }
 0x283   : > { %v454_v55 = vadd.f32 %v824_v52, %v453_v51  ;;  %v636_v60 = vpop.eup %635  ;;  %647 = vpow2.f32 %v441_v2 }
 0x284   : > { %v638_v0 = vpop.eup %637  ;;  %649 = vpow2.f32 %v443_v8 }
 0x285   : > { %v455_v59 = vadd.f32 %v829_v56, %v454_v55  ;;  %v838_v7 = vpop.eup %639  ;;  %651 = vpow2.f32 %v445_v11 }
 0x286   : > { %v843_v5 = vpop.eup %641  ;;  %653 = vpow2.f32 %v447_v17 }
 0x287   : > { %v456_v61 = vadd.f32 %v636_v60, %v455_v59  ;;  %v644_v15 = vpop.eup %643  ;;  %655 = vpow2.f32 %v449_v19 }
 0x288   : > { %v646_v18 = vpop.eup %645  ;;  %657 = vpow2.f32 %v451_v23 }
 0x289   : > { %v457_v3 = vadd.f32 %v638_v0, %v456_v61  ;;  %v648_v22 = vpop.eup %647 }
 0x28a   : > { %v650_v14 = vpop.eup %649 }
 0x28b   : > { %v458_v9 = vadd.f32 %v838_v7, %v457_v3  ;;  %v652_v26 = vpop.eup %651 }
 0x28c   : > { %v654_v28 = vpop.eup %653 }
 0x28d   : > { %v459_v13 = vadd.f32 %v843_v5, %v458_v9  ;;  %v656_v20 = vpop.eup %655 }
 0x28e   : > { %v658_v31 = vpop.eup %657 }
 0x28f   : > { %v460_v6 = vadd.f32 %v644_v15, %v459_v13 }
 0x291   : > { %v461_v21 = vadd.f32 %v646_v18, %v460_v6 }
 0x293   : > { %v462_v24 = vadd.f32 %v648_v22, %v461_v21 }
 0x295   : > { %v463_v25 = vadd.f32 %v650_v14, %v462_v24 }
 0x297   : > { %v464_v27 = vadd.f32 %v652_v26, %v463_v25 }
 0x299   : > { %v465_v29 = vadd.f32 %v654_v28, %v464_v27 }
 0x29b   : > { %v466_v30 = vadd.f32 %v656_v20, %v465_v29 }
 0x29d   : > { %v467_v32 = vadd.f32 %v658_v31, %v466_v30 }
 0x29f   : > { %v468_v33 = vrot.slane %v467_v32, 4 }
 0x2a1   : > { %v469_v34 = vadd.f32 %v468_v33, %v467_v32 }
 0x2a3   : > { %v470_v35 = vrot.slane %v469_v34, 2 }
 0x2a5   : > { %v471_v36 = vadd.f32 %v470_v35, %v469_v34 }
 0x2a7   : > { %v472_v37 = vrot.slane %v471_v36, 1 }
 0x2a9   : > { %v473_v38 = vadd.f32 %v472_v37, %v471_v36 }
 0x2ab   : > { %659 = vrcp.f32 %v473_v38 }
 0x2b1   : > { %v660_v39 = vpop.eup %659 }
 0x2b2   : > { %v489_v40 = vmul.f32 %v660_v39, %v656_v20  ;;  %v490_v41 = vmul.f32 %v660_v39, %v658_v31  ;;  %v487_v43 = vmul.f32 %v660_v39, %v652_v26  ;;  %v488_v44 = vmul.f32 %v660_v39, %v654_v28 }
 0x2b3   : > { %v479_v45 = vmul.f32 %v660_v39, %v636_v60  ;;  %v480_v46 = vmul.f32 %v660_v39, %v638_v0  ;;  %v477_v49 = vmul.f32 %v660_v39, %v824_v52  ;;  %v478_v50 = vmul.f32 %v660_v39, %v829_v56 }
 0x2b4   : > { %v499_v42 = vpack.c.bf16 %v490_v41, %v489_v40  ;;  %v475_v51 = vmul.f32 %v660_v39, %v816_v47  ;;  %v476_v54 = vmul.f32 %v660_v39, %v818_v48  ;;  %v498_v55 = vpack.c.bf16 %v488_v44, %v487_v43 }
 0x2b5   : > { %v494_v53 = vpack.c.bf16 %v480_v46, %v479_v45  ;;  %v485_v57 = vmul.f32 %v660_v39, %v648_v22  ;;  %v486_v58 = vmul.f32 %v660_v39, %v650_v14  ;;  %v493_v59 = vpack.c.bf16 %v478_v50, %v477_v49 }
 0x2b6   : > { %504 = vmatpush.bf16.msra.mxu2 %v499_v42  ;;  %v492_v62 = vpack.c.bf16 %v476_v54, %v475_v51  ;;  %v483_v60 = vmul.f32 %v660_v39, %v644_v15  ;;  %v484_v61 = vmul.f32 %v660_v39, %v646_v18  ;;  %v481_v52 = vmul.f32 %v660_v39, %v838_v7 }
 0x2b7   : > { %v497_v63 = vpack.c.bf16 %v486_v58, %v485_v57  ;;  %v482_v56 = vmul.f32 %v660_v39, %v843_v5  ;;  %v491_v48 = vpack.c.bf16 %v715_v12, %v715_v12 }
 0x2b8   : > { %v496_v0 = vpack.c.bf16 %v484_v61, %v483_v60 }
 0x2b9   : > { %v495_v47 = vpack.c.bf16 %v482_v56, %v481_v52 }
 0x2ba   : > { %505 = vmatpush.bf16.msra.mxu2 %v498_v55 }
 0x2be   : > { %506 = vmatpush.bf16.msra.mxu2 %v497_v63 }
 0x2c2   : > { %507 = vmatpush.bf16.msra.mxu2 %v496_v0 }
 0x2c6   : > { %508 = vmatpush.bf16.msra.mxu2 %v495_v47 }
 0x2ca   : > { %509 = vmatpush.bf16.msra.mxu2 %v494_v53 }
 0x2ce   : > { %510 = vmatpush.bf16.msra.mxu2 %v493_v59 }
 0x2d2   : > { %511 = vmatpush.bf16.msra.mxu2 %v492_v62 }
 0x2d5   : > { %512 = vmatmul.bf16.vlgmr.msra.gmra.mxu2 %v491_v48 }
 0x358   : > { %v513_v2 = vpop.f32.mrf.mxu2 }
 0x359   : > { %v514_v3 = vadd.f32 %v626_v1, %v513_v2 }
 0x35b   : > { %517 = vst [vmem:[%s195_s12] sm:$0xff] %v514_v3 }
 0x360   : > { %v515_v7 = vpop.f32.mrf.mxu2 }
 0x361 PF: > { %s14_s15 = sadd.s32 1, %s667_s15  }
 0x362   : > { %p11_p4 = scmp.ge.s32.totalorder %s14_s15, 4  }
 0x364   :  { %13 = sbr.rel (!%p11_p4) target bundleno = 1 (0x1), region = 66 }

</bundles_post_ra>
